<compile_context>
chip_gen: v5e
topology: v5e:2x2
jax: 0.10.0
libtpu: 0.0.40
codegen_flags: <defaults>
</compile_context>

<pallas_src>
import math
import functools

import jax
import jax.numpy as jnp
from jax.experimental import pallas as pl
from jax.experimental.pallas import tpu as pltpu


L1, L2, L3, L4 = 5, 64, 32, 8
RATIO1, RATIO2, RATIO3 = 0.01, 0.1, 0.1

# contract the last dim of both operands (a @ b.T) -> lane-dense (1, M) score rows
_NT = (((1,), (1,)), ((), ()))


def _lane_score(wn_ref, feats):
    """tanh(feats . w_normalized) as a lane-dense (1, M) row, contraction on the MXU."""
    return jnp.tanh(
        jax.lax.dot_general(wn_ref[...], feats, _NT,
                            preferred_element_type=jnp.float32))


def _topk_gate_gather(scores, feats, k):
    """TopKPooling select+gate: feats[perm] * scores[perm, None] for the top-k scores.

    scores: (1, M) lane-dense tanh scores; feats: (M, F); k: static int.
    Iterative argmax (ties -> lowest index, descending order); the gather and the
    score gating are fused into one gated-one-hot (k, M) @ (M, F) MXU matmul.
    """
    m_count = scores.shape[1]
    lane = jax.lax.broadcasted_iota(jnp.int32, (1, m_count), 1).astype(jnp.float32)
    rows = []
    s = scores
    for _ in range(k):                                    # k <= 3: fully unrolled
        mx = jnp.max(s, axis=1, keepdims=True)            # (1, 1) current max score
        idx = jnp.min(jnp.where(s == mx, lane, float(m_count)),
                      axis=1, keepdims=True)              # (1, 1) first index of max
        onehot = lane == idx                               # (1, M)
        rows.append(jnp.where(onehot, mx, 0.0))            # gated one-hot row
        s = jnp.where(onehot, -jnp.inf, s)                 # mask out for next pick
    sel = rows[0] if k == 1 else jnp.concatenate(rows, axis=0)   # (k, M)
    return jnp.dot(sel, feats, preferred_element_type=jnp.float32)


def _net_fused_kernel(x_ref, w1n_ref, wih_t_ref, brnn_ref,
                      w2n_ref, w2t_ref, b2_ref,
                      w3n_ref, w3t_ref, b3_ref, out_ref, *, k1, k2, k3):
    x = x_ref[...]                                         # (N, L1)

    # ---- pool1: lane-dense score (1, N), in-kernel top-k1 select + gate ----
    s1 = _lane_score(w1n_ref, x)
    x1 = _topk_gate_gather(s1, x, k1)                      # (k1, L1)

    # ---- RNNCell(L1 -> L2), zero hidden: h = tanh(x1 @ W_ih^T + b_ih + b_hh) ----
    h = jnp.tanh(jnp.dot(x1, wih_t_ref[...],
                         preferred_element_type=jnp.float32) + brnn_ref[...])   # (k1, L2)

    # ---- pool2 + ReLU(Linear(L2 -> L3)) ----
    s2 = _lane_score(w2n_ref, h)                           # (1, k1)
    h2 = _topk_gate_gather(s2, h, k2)                      # (k2, L2)
    y2 = jnp.maximum(
        jnp.dot(h2, w2t_ref[...], preferred_element_type=jnp.float32) + b2_ref[...],
        0.0)                                               # (k2, L3)

    # ---- pool3 + Linear(L3 -> L4) ----
    s3 = _lane_score(w3n_ref, y2)                          # (1, k2)
    y3 = _topk_gate_gather(s3, y2, k3)                     # (k3, L3)
    out_ref[...] = (jnp.dot(y3, w3t_ref[...], preferred_element_type=jnp.float32)
                    + b3_ref[...]).astype(out_ref.dtype)   # (k3, L4)


def init_params(key):
    ks = jax.random.split(key, 10)
    p = {}

    def _unit(w):  # fold ||w|| into the pooling weight once, at init
        return w / jnp.sqrt(jnp.sum(w * w))

    # TopKPooling attention weights (pre-normalized): shape (1, in_channels)
    p["pool1_wn"] = _unit(jax.random.normal(ks[0], (1, L1), jnp.float32) * 0.5)
    p["pool2_wn"] = _unit(jax.random.normal(ks[1], (1, L2), jnp.float32) * 0.2)
    p["pool3_wn"] = _unit(jax.random.normal(ks[2], (1, L3), jnp.float32) * 0.2)
    # RNNCell(L1, L2): h = tanh(x @ W_ih^T + b_ih + 0 @ W_hh^T + b_hh)   (hidden None)
    w_ih = jax.random.normal(ks[3], (L2, L1), jnp.float32) * 0.3
    b_ih = jax.random.normal(ks[4], (L2,), jnp.float32) * 0.1
    b_hh = jax.random.normal(ks[5], (L2,), jnp.float32) * 0.1
    p["w_ih_t"] = w_ih.T                                   # (L1, L2)
    p["b_rnn"] = (b_ih + b_hh)[None, :]                    # (1, L2)
    # Linear(L2, L3)
    w2 = jax.random.normal(ks[6], (L3, L2), jnp.float32) * 0.2
    b2 = jax.random.normal(ks[7], (L3,), jnp.float32) * 0.1
    p["w2_t"], p["b2"] = w2.T, b2[None, :]
    # Linear(L3, L4)
    w3 = jax.random.normal(ks[8], (L4, L3), jnp.float32) * 0.2
    b3 = jax.random.normal(ks[9], (L4,), jnp.float32) * 0.1
    p["w3_t"], p["b3"] = w3.T, b3[None, :]
    return p


def net_forward(params, x, edge_index, batch):
    del edge_index, batch   # single graph; edges do not affect the returned node features
    n = x.shape[0]
    k1 = max(1, int(math.ceil(RATIO1 * n)))
    k2 = max(1, int(math.ceil(RATIO2 * k1)))
    k3 = max(1, int(math.ceil(RATIO3 * k2)))

    kernel = functools.partial(_net_fused_kernel, k1=k1, k2=k2, k3=k3)
    vmem = lambda: pl.BlockSpec(memory_space=pltpu.MemorySpace.VMEM)

    return pl.pallas_call(
        kernel,
        out_shape=jax.ShapeDtypeStruct((k3, L4), jnp.float32),
        in_specs=[vmem() for _ in range(10)],
        out_specs=vmem(),
    )(x, params["pool1_wn"], params["w_ih_t"], params["b_rnn"],
      params["pool2_wn"], params["w2_t"], params["b2"],
      params["pool3_wn"], params["w3_t"], params["b3"])


if __name__ == "__main__":
    key = jax.random.PRNGKey(0)
    k_param, k_x, k_e = jax.random.split(key, 3)

    N_NODES, N_EDGES = 256, 512
    params = init_params(k_param)

    x = jax.random.normal(k_x, (N_NODES, L1), jnp.float32)
    edge_index = jax.random.randint(k_e, (2, N_EDGES), 0, N_NODES, dtype=jnp.int32)
    batch = jnp.zeros((N_NODES,), dtype=jnp.int32)   # single graph

    out = net_forward(params, x, edge_index, batch)
    out = jax.block_until_ready(out)

    k1 = math.ceil(RATIO1 * N_NODES)
    k2 = math.ceil(RATIO2 * k1)
    k3 = math.ceil(RATIO3 * k2)
    assert out.shape == (k3, L4)
    assert bool(jnp.all(jnp.isfinite(out)))
    print("KERNEL_OK")
</pallas_src>

<mosaic_0001>
module attributes {stable_mosaic.version = 11 : i64} {
  func.func @_net_fused_kernel(%arg0: memref<256x5xf32, #tpu.memory_space<vmem>>, %arg1: memref<1x5xf32, #tpu.memory_space<vmem>>, %arg2: memref<5x64xf32, #tpu.memory_space<vmem>>, %arg3: memref<1x64xf32, #tpu.memory_space<vmem>>, %arg4: memref<1x64xf32, #tpu.memory_space<vmem>>, %arg5: memref<64x32xf32, #tpu.memory_space<vmem>>, %arg6: memref<1x32xf32, #tpu.memory_space<vmem>>, %arg7: memref<1x32xf32, #tpu.memory_space<vmem>>, %arg8: memref<32x8xf32, #tpu.memory_space<vmem>>, %arg9: memref<1x8xf32, #tpu.memory_space<vmem>>, %arg10: memref<1x8xf32, #tpu.memory_space<vmem>>) attributes {dimension_semantics = [], scalar_prefetch = 0 : i64, scratch_operands = 0 : i64, tpu.core_type = #tpu.core_type<tc>} {
    %c0 = arith.constant 0 : index
    %c0_0 = arith.constant 0 : index
    %0 = vector.load %arg0[%c0, %c0_0] : memref<256x5xf32, #tpu.memory_space<vmem>>, vector<256x5xf32>
    %c0_1 = arith.constant 0 : index
    %c0_2 = arith.constant 0 : index
    %1 = vector.load %arg1[%c0_1, %c0_2] : memref<1x5xf32, #tpu.memory_space<vmem>>, vector<1x5xf32>
    %cst = arith.constant dense<0.000000e+00> : vector<1x256xf32>
    %2 = tpu.matmul %1, %0, %cst {dimension_numbers = #tpu.dot_dimension_numbers<[1], [1], [0], [0], [0, 0, 1, 0], [], []>} : vector<1x5xf32>, vector<256x5xf32>, vector<1x256xf32> -> vector<1x256xf32>
    %3 = math.tanh %2 : vector<1x256xf32>
    %4 = tpu.iota {dimensions = array<i32: 1>} : vector<1x256xi32>
    %5 = arith.sitofp %4 : vector<1x256xi32> to vector<1x256xf32>
    %cst_3 = arith.constant dense<0xFF800000> : vector<1xf32>
    %6 = vector.multi_reduction <maximumf>, %3, %cst_3 [1] : vector<1x256xf32> to vector<1xf32>
    %7 = vector.shape_cast %6 : vector<1xf32> to vector<1x1xf32>
    %8 = vector.broadcast %7 : vector<1x1xf32> to vector<1x256xf32>
    %9 = arith.cmpf oeq, %3, %8 : vector<1x256xf32>
    %cst_4 = arith.constant 2.560000e+02 : f32
    %10 = vector.broadcast %cst_4 : f32 to vector<1x256xf32>
    %11 = arith.select %9, %5, %10 : vector<1x256xi1>, vector<1x256xf32>
    %cst_5 = arith.constant dense<0x7F800000> : vector<1xf32>
    %12 = vector.multi_reduction <minimumf>, %11, %cst_5 [1] : vector<1x256xf32> to vector<1xf32>
    %13 = vector.shape_cast %12 : vector<1xf32> to vector<1x1xf32>
    %14 = vector.broadcast %13 : vector<1x1xf32> to vector<1x256xf32>
    %15 = arith.cmpf oeq, %5, %14 : vector<1x256xf32>
    %cst_6 = arith.constant 0.000000e+00 : f32
    %16 = vector.shape_cast %7 : vector<1x1xf32> to vector<1x1xf32>
    %17 = vector.broadcast %16 : vector<1x1xf32> to vector<1x256xf32>
    %18 = vector.broadcast %cst_6 : f32 to vector<1x256xf32>
    %19 = arith.select %15, %17, %18 : vector<1x256xi1>, vector<1x256xf32>
    %cst_7 = arith.constant 0xFF800000 : f32
    %20 = vector.broadcast %cst_7 : f32 to vector<1x256xf32>
    %21 = arith.select %15, %20, %3 : vector<1x256xi1>, vector<1x256xf32>
    %cst_8 = arith.constant dense<0xFF800000> : vector<1xf32>
    %22 = vector.multi_reduction <maximumf>, %21, %cst_8 [1] : vector<1x256xf32> to vector<1xf32>
    %23 = vector.shape_cast %22 : vector<1xf32> to vector<1x1xf32>
    %24 = vector.broadcast %23 : vector<1x1xf32> to vector<1x256xf32>
    %25 = arith.cmpf oeq, %21, %24 : vector<1x256xf32>
    %cst_9 = arith.constant 2.560000e+02 : f32
    %26 = vector.broadcast %cst_9 : f32 to vector<1x256xf32>
    %27 = arith.select %25, %5, %26 : vector<1x256xi1>, vector<1x256xf32>
    %cst_10 = arith.constant dense<0x7F800000> : vector<1xf32>
    %28 = vector.multi_reduction <minimumf>, %27, %cst_10 [1] : vector<1x256xf32> to vector<1xf32>
    %29 = vector.shape_cast %28 : vector<1xf32> to vector<1x1xf32>
    %30 = vector.broadcast %29 : vector<1x1xf32> to vector<1x256xf32>
    %31 = arith.cmpf oeq, %5, %30 : vector<1x256xf32>
    %cst_11 = arith.constant 0.000000e+00 : f32
    %32 = vector.shape_cast %23 : vector<1x1xf32> to vector<1x1xf32>
    %33 = vector.broadcast %32 : vector<1x1xf32> to vector<1x256xf32>
    %34 = vector.broadcast %cst_11 : f32 to vector<1x256xf32>
    %35 = arith.select %31, %33, %34 : vector<1x256xi1>, vector<1x256xf32>
    %cst_12 = arith.constant 0xFF800000 : f32
    %36 = vector.broadcast %cst_12 : f32 to vector<1x256xf32>
    %37 = arith.select %31, %36, %21 : vector<1x256xi1>, vector<1x256xf32>
    %cst_13 = arith.constant dense<0xFF800000> : vector<1xf32>
    %38 = vector.multi_reduction <maximumf>, %37, %cst_13 [1] : vector<1x256xf32> to vector<1xf32>
    %39 = vector.shape_cast %38 : vector<1xf32> to vector<1x1xf32>
    %40 = vector.broadcast %39 : vector<1x1xf32> to vector<1x256xf32>
    %41 = arith.cmpf oeq, %37, %40 : vector<1x256xf32>
    %cst_14 = arith.constant 2.560000e+02 : f32
    %42 = vector.broadcast %cst_14 : f32 to vector<1x256xf32>
    %43 = arith.select %41, %5, %42 : vector<1x256xi1>, vector<1x256xf32>
    %cst_15 = arith.constant dense<0x7F800000> : vector<1xf32>
    %44 = vector.multi_reduction <minimumf>, %43, %cst_15 [1] : vector<1x256xf32> to vector<1xf32>
    %45 = vector.shape_cast %44 : vector<1xf32> to vector<1x1xf32>
    %46 = vector.broadcast %45 : vector<1x1xf32> to vector<1x256xf32>
    %47 = arith.cmpf oeq, %5, %46 : vector<1x256xf32>
    %cst_16 = arith.constant 0.000000e+00 : f32
    %48 = vector.shape_cast %39 : vector<1x1xf32> to vector<1x1xf32>
    %49 = vector.broadcast %48 : vector<1x1xf32> to vector<1x256xf32>
    %50 = vector.broadcast %cst_16 : f32 to vector<1x256xf32>
    %51 = arith.select %47, %49, %50 : vector<1x256xi1>, vector<1x256xf32>
    %52 = tpu.concatenate %19, %35, %51 in 0 : vector<1x256xf32>, vector<1x256xf32>, vector<1x256xf32> -> vector<3x256xf32>
    %cst_17 = arith.constant dense<0.000000e+00> : vector<3x5xf32>
    %53 = tpu.matmul %52, %0, %cst_17 {dimension_numbers = #tpu.dot_dimension_numbers<[1], [0], [0], [1], [0, 0, 1, 1], [], []>} : vector<3x256xf32>, vector<256x5xf32>, vector<3x5xf32> -> vector<3x5xf32>
    %c0_18 = arith.constant 0 : index
    %c0_19 = arith.constant 0 : index
    %54 = vector.load %arg2[%c0_18, %c0_19] : memref<5x64xf32, #tpu.memory_space<vmem>>, vector<5x64xf32>
    %cst_20 = arith.constant dense<0.000000e+00> : vector<3x64xf32>
    %55 = tpu.matmul %53, %54, %cst_20 {dimension_numbers = #tpu.dot_dimension_numbers<[1], [0], [0], [1], [0, 0, 1, 1], [], []>} : vector<3x5xf32>, vector<5x64xf32>, vector<3x64xf32> -> vector<3x64xf32>
    %c0_21 = arith.constant 0 : index
    %c0_22 = arith.constant 0 : index
    %56 = vector.load %arg3[%c0_21, %c0_22] : memref<1x64xf32, #tpu.memory_space<vmem>>, vector<1x64xf32>
    %57 = vector.broadcast %56 : vector<1x64xf32> to vector<3x64xf32>
    %58 = arith.addf %55, %57 : vector<3x64xf32>
    %59 = math.tanh %58 : vector<3x64xf32>
    %c0_23 = arith.constant 0 : index
    %c0_24 = arith.constant 0 : index
    %60 = vector.load %arg4[%c0_23, %c0_24] : memref<1x64xf32, #tpu.memory_space<vmem>>, vector<1x64xf32>
    %cst_25 = arith.constant dense<0.000000e+00> : vector<1x3xf32>
    %61 = tpu.matmul %60, %59, %cst_25 {dimension_numbers = #tpu.dot_dimension_numbers<[1], [1], [0], [0], [0, 0, 1, 0], [], []>} : vector<1x64xf32>, vector<3x64xf32>, vector<1x3xf32> -> vector<1x3xf32>
    %62 = math.tanh %61 : vector<1x3xf32>
    %63 = tpu.iota {dimensions = array<i32: 1>} : vector<1x3xi32>
    %64 = arith.sitofp %63 : vector<1x3xi32> to vector<1x3xf32>
    %cst_26 = arith.constant dense<0xFF800000> : vector<1xf32>
    %65 = vector.multi_reduction <maximumf>, %62, %cst_26 [1] : vector<1x3xf32> to vector<1xf32>
    %66 = vector.shape_cast %65 : vector<1xf32> to vector<1x1xf32>
    %67 = vector.broadcast %66 : vector<1x1xf32> to vector<1x3xf32>
    %68 = arith.cmpf oeq, %62, %67 : vector<1x3xf32>
    %cst_27 = arith.constant 3.000000e+00 : f32
    %69 = vector.broadcast %cst_27 : f32 to vector<1x3xf32>
    %70 = arith.select %68, %64, %69 : vector<1x3xi1>, vector<1x3xf32>
    %cst_28 = arith.constant dense<0x7F800000> : vector<1xf32>
    %71 = vector.multi_reduction <minimumf>, %70, %cst_28 [1] : vector<1x3xf32> to vector<1xf32>
    %72 = vector.shape_cast %71 : vector<1xf32> to vector<1x1xf32>
    %73 = vector.broadcast %72 : vector<1x1xf32> to vector<1x3xf32>
    %74 = arith.cmpf oeq, %64, %73 : vector<1x3xf32>
    %cst_29 = arith.constant 0.000000e+00 : f32
    %75 = vector.shape_cast %66 : vector<1x1xf32> to vector<1x1xf32>
    %76 = vector.broadcast %75 : vector<1x1xf32> to vector<1x3xf32>
    %77 = vector.broadcast %cst_29 : f32 to vector<1x3xf32>
    %78 = arith.select %74, %76, %77 : vector<1x3xi1>, vector<1x3xf32>
    %cst_30 = arith.constant dense<0.000000e+00> : vector<1x64xf32>
    %79 = tpu.matmul %78, %59, %cst_30 {dimension_numbers = #tpu.dot_dimension_numbers<[1], [0], [0], [1], [0, 0, 1, 1], [], []>} : vector<1x3xf32>, vector<3x64xf32>, vector<1x64xf32> -> vector<1x64xf32>
    %c0_31 = arith.constant 0 : index
    %c0_32 = arith.constant 0 : index
    %80 = vector.load %arg5[%c0_31, %c0_32] : memref<64x32xf32, #tpu.memory_space<vmem>>, vector<64x32xf32>
    %cst_33 = arith.constant dense<0.000000e+00> : vector<1x32xf32>
    %81 = tpu.matmul %79, %80, %cst_33 {dimension_numbers = #tpu.dot_dimension_numbers<[1], [0], [0], [1], [0, 0, 1, 1], [], []>} : vector<1x64xf32>, vector<64x32xf32>, vector<1x32xf32> -> vector<1x32xf32>
    %c0_34 = arith.constant 0 : index
    %c0_35 = arith.constant 0 : index
    %82 = vector.load %arg6[%c0_34, %c0_35] : memref<1x32xf32, #tpu.memory_space<vmem>>, vector<1x32xf32>
    %83 = arith.addf %81, %82 : vector<1x32xf32>
    %cst_36 = arith.constant 0.000000e+00 : f32
    %84 = vector.broadcast %cst_36 : f32 to vector<1x32xf32>
    %85 = arith.maximumf %83, %84 : vector<1x32xf32>
    %c0_37 = arith.constant 0 : index
    %c0_38 = arith.constant 0 : index
    %86 = vector.load %arg7[%c0_37, %c0_38] : memref<1x32xf32, #tpu.memory_space<vmem>>, vector<1x32xf32>
    %cst_39 = arith.constant dense<0.000000e+00> : vector<1x1xf32>
    %87 = tpu.matmul %86, %85, %cst_39 {dimension_numbers = #tpu.dot_dimension_numbers<[1], [1], [0], [0], [0, 0, 1, 0], [], []>} : vector<1x32xf32>, vector<1x32xf32>, vector<1x1xf32> -> vector<1x1xf32>
    %88 = math.tanh %87 : vector<1x1xf32>
    %89 = tpu.iota {dimensions = array<i32: 1>} : vector<1x1xi32>
    %90 = arith.sitofp %89 : vector<1x1xi32> to vector<1x1xf32>
    %cst_40 = arith.constant dense<0xFF800000> : vector<1xf32>
    %91 = vector.multi_reduction <maximumf>, %88, %cst_40 [1] : vector<1x1xf32> to vector<1xf32>
    %92 = vector.shape_cast %91 : vector<1xf32> to vector<1x1xf32>
    %93 = arith.cmpf oeq, %88, %92 : vector<1x1xf32>
    %cst_41 = arith.constant 1.000000e+00 : f32
    %94 = vector.broadcast %cst_41 : f32 to vector<1x1xf32>
    %95 = arith.select %93, %90, %94 : vector<1x1xi1>, vector<1x1xf32>
    %cst_42 = arith.constant dense<0x7F800000> : vector<1xf32>
    %96 = vector.multi_reduction <minimumf>, %95, %cst_42 [1] : vector<1x1xf32> to vector<1xf32>
    %97 = vector.shape_cast %96 : vector<1xf32> to vector<1x1xf32>
    %98 = arith.cmpf oeq, %90, %97 : vector<1x1xf32>
    %cst_43 = arith.constant 0.000000e+00 : f32
    %99 = vector.broadcast %cst_43 : f32 to vector<1x1xf32>
    %100 = arith.select %98, %92, %99 : vector<1x1xi1>, vector<1x1xf32>
    %cst_44 = arith.constant dense<0.000000e+00> : vector<1x32xf32>
    %101 = tpu.matmul %100, %85, %cst_44 {dimension_numbers = #tpu.dot_dimension_numbers<[1], [0], [0], [1], [0, 0, 1, 1], [], []>} : vector<1x1xf32>, vector<1x32xf32>, vector<1x32xf32> -> vector<1x32xf32>
    %c0_45 = arith.constant 0 : index
    %c0_46 = arith.constant 0 : index
    %102 = vector.load %arg8[%c0_45, %c0_46] : memref<32x8xf32, #tpu.memory_space<vmem>>, vector<32x8xf32>
    %cst_47 = arith.constant dense<0.000000e+00> : vector<1x8xf32>
    %103 = tpu.matmul %101, %102, %cst_47 {dimension_numbers = #tpu.dot_dimension_numbers<[1], [0], [0], [1], [0, 0, 1, 1], [], []>} : vector<1x32xf32>, vector<32x8xf32>, vector<1x8xf32> -> vector<1x8xf32>
    %c0_48 = arith.constant 0 : index
    %c0_49 = arith.constant 0 : index
    %104 = vector.load %arg9[%c0_48, %c0_49] : memref<1x8xf32, #tpu.memory_space<vmem>>, vector<1x8xf32>
    %105 = arith.addf %103, %104 : vector<1x8xf32>
    %c0_50 = arith.constant 0 : index
    %c0_51 = arith.constant 0 : index
    %106 = vector.load %arg10[%c0_50, %c0_51] : memref<1x8xf32, #tpu.memory_space<vmem>>, vector<1x8xf32>
    tpu.vector_store %arg10[%c0_50, %c0_51], %105 {strides = array<i32>} : memref<1x8xf32, #tpu.memory_space<vmem>>, vector<1x8xf32>,
    return
  }
}

</mosaic_0001>

<bundles_post_ra>
// kernel: tpu_custom_call.1
= control target key start
LH: loop header
LB: loop body
LE: loop exit
PB: predicated region body
PF: predicated region fallthrough
CT: control target
= control target key end

     0   :  { %vm69_vm0 = vcmask 39936   ;;  %s915_s0 = inlined_call_operand.vmem [shape: f32[256,5], index: 0, kind: input, shape index: {}]   ;;  %s916_s1 = inlined_call_operand.vmem [shape: f32[1,5], index: 1, kind: input, shape index: {}]   ;;  %s917_s2 = inlined_call_operand.vmem [shape: f32[5,64], index: 2, kind: input, shape index: {}]   ;;  %s918_s3 = inlined_call_operand.vmem [shape: f32[1,64], index: 3, kind: input, shape index: {}]   ;;  %s919_s4 = inlined_call_operand.vmem [shape: f32[1,64], index: 4, kind: input, shape index: {}]   ;;  %s920_s5 = inlined_call_operand.vmem [shape: f32[64,32], index: 5, kind: input, shape index: {}]   ;;  %s921_s6 = inlined_call_operand.vmem [shape: f32[1,32], index: 6, kind: input, shape index: {}]   ;;  %s922_s7 = inlined_call_operand.vmem [shape: f32[1,32], index: 7, kind: input, shape index: {}]   ;;  %s923_s8 = inlined_call_operand.vmem [shape: f32[32,8], index: 8, kind: input, shape index: {}]   ;;  %s924_s9 = inlined_call_operand.vmem [shape: f32[1,8], index: 9, kind: input, shape index: {}]   ;;  %s925_s10 = inlined_call_operand.hbm [shape: f32[1,8], index: 10, kind: output, shape index: {}]  }
   0x1   :  { %v51_v0 = vld [vmem:[%s915_s0 + $0x78] sm:$0xff]  ;;  %v50_v2 = vld [vmem:[%s915_s0 + $0x70] sm:$0xff]  ;;  %v49_v4 = vld [vmem:[%s915_s0 + $0x68] sm:$0xff] }
   0x2   :  { %v67_v1 = vld [vmem:[%s915_s0 + $0xf8] sm:$0xff]  ;;  %550 = vmatpush.xpose.msk.msra.mxu0 %vm69_vm0, %v51_v0  ;;  %v66_v3 = vld [vmem:[%s915_s0 + $0xf0] sm:$0xff]  ;;  %292 = vmatpush.msra.mxu2 %v51_v0  ;;  %v65_v5 = vld [vmem:[%s915_s0 + $0xe8] sm:$0xff] }
   0x3   :  { %567 = vmatpush.xpose.msk.msra.mxu1 %vm69_vm0, %v67_v1  ;;  %312 = vmatpush.msra.mxu3 %v67_v1  ;;  %v48_v6 = vld [vmem:[%s915_s0 + $0x60] sm:$0xff] }
   0x4   :  { %293 = vmatpush.msra.mxu2 %v50_v2  ;;  %v64_v7 = vld [vmem:[%s915_s0 + $0xe0] sm:$0xff] }
   0x5   :  { %313 = vmatpush.msra.mxu3 %v66_v3 }
   0x6   :  { %551 = vmatpush.xpose.msk.msra.mxu0 %vm69_vm0, %v50_v2  ;;  %294 = vmatpush.msra.mxu2 %v49_v4 }
   0x7   :  { %568 = vmatpush.xpose.msk.msra.mxu1 %vm69_vm0, %v66_v3  ;;  %314 = vmatpush.msra.mxu3 %v65_v5 }
   0x8   :  { %15 = vsyncpa [#allocation3], 0  ;;  %295 = vmatpush.msra.mxu2 %v48_v6  ;;  %v47_v8 = vld [vmem:[%s915_s0 + $0x58] sm:$0xff]  ;;  %v46_v10 = vld [vmem:[%s915_s0 + $0x50] sm:$0xff]  ;;  %vm216_vm1 = vcmask 1040384   ;;  %v211_v40 = vlaneseq  ;;  %vm289_vm14 = vcmask 1041408  }
   0x9   :  { %315 = vmatpush.msra.mxu3 %v64_v7  ;;  %v63_v9 = vld [vmem:[%s915_s0 + $0xd8] sm:$0xff]  ;;  %v62_v11 = vld [vmem:[%s915_s0 + $0xd0] sm:$0xff]  ;;  %v45_v12 = vld [vmem:[%s915_s0 + $0x48] sm:$0xff]  ;;  %vm340_vm15 = vcmask 1044480   ;;  %s632_s23 = smov [#allocation2]   ;;  %s541_s26 = sshll.u32 %s925_s10, 4  ;;  %s542_s26 = int_to_ptr.hbm [resolvable:$true] %s541_s26 }
   0xa   :  { %552 = vmatpush.xpose.msk.msra.mxu0 %vm69_vm0, %v49_v4  ;;  %296 = vmatpush.msra.mxu2 %v47_v8  ;;  %v61_v13 = vld [vmem:[%s915_s0 + $0xc8] sm:$0xff]  ;;  %v44_v14 = vld [vmem:[%s915_s0 + $0x40] sm:$0xff]  ;;  %v43_v16 = vld [vmem:[%s915_s0 + $0x38] sm:$0xff]  ;;  %v212_v41 = vand.u32 127, %v211_v40 }
   0xb   :  { %569 = vmatpush.xpose.msk.msra.mxu1 %vm69_vm0, %v65_v5  ;;  %316 = vmatpush.msra.mxu3 %v63_v9  ;;  %v60_v15 = vld [vmem:[%s915_s0 + $0xc0] sm:$0xff]  ;;  %v59_v17 = vld [vmem:[%s915_s0 + $0xb8] sm:$0xff]  ;;  %v42_v18 = vld [vmem:[%s915_s0 + $0x30] sm:$0xff] }
   0xc   :  { %297 = vmatpush.msra.mxu2 %v46_v10  ;;  %v58_v19 = vld [vmem:[%s915_s0 + $0xb0] sm:$0xff]  ;;  %v41_v20 = vld [vmem:[%s915_s0 + $0x28] sm:$0xff]  ;;  %v40_v22 = vld [vmem:[%s915_s0 + $0x20] sm:$0xff]  ;;  %v213_v42 = vadd.s32 128, %v212_v41  ;;  %v823_v43 = vcvt.s32.f32 %v212_v41 }
   0xd   :  { %317 = vmatpush.msra.mxu3 %v62_v11  ;;  %v57_v21 = vld [vmem:[%s915_s0 + $0xa8] sm:$0xff]  ;;  %v56_v23 = vld [vmem:[%s915_s0 + $0xa0] sm:$0xff]  ;;  %v39_v24 = vld [vmem:[%s915_s0 + $0x18] sm:$0xff] }
   0xe   :  { %553 = vmatpush.xpose.msk.msra.mxu0 %vm69_vm0, %v48_v6  ;;  %298 = vmatpush.msra.mxu2 %v45_v12  ;;  %v55_v25 = vld [vmem:[%s915_s0 + $0x98] sm:$0xff]  ;;  %v38_v26 = vld [vmem:[%s915_s0 + $0x10] sm:$0xff]  ;;  %v37_v28 = vld [vmem:[%s915_s0 + $0x8] sm:$0xff]  ;;  %v215_v44 = vcvt.s32.f32 %v213_v42 }
   0xf   :  { %570 = vmatpush.xpose.msk.msra.mxu1 %vm69_vm0, %v64_v7  ;;  %318 = vmatpush.msra.mxu3 %v61_v13  ;;  %v54_v27 = vld [vmem:[%s915_s0 + $0x90] sm:$0xff]  ;;  %v53_v29 = vld [vmem:[%s915_s0 + $0x88] sm:$0xff]  ;;  %v36_v30 = vld [vmem:[%s915_s0] sm:$0xff] }
  0x10   :  { %299 = vmatpush.msra.mxu2 %v44_v14  ;;  %v52_v31 = vld [vmem:[%s915_s0 + $0x80] sm:$0xff]  ;;  %v439_v41 = vld [vmem:[%s920_s5 + $0x38] sm:$0xff]  ;;  %v438_v42 = vld [vmem:[%s920_s5 + $0x30] sm:$0xff] }
  0x11   :  { %319 = vmatpush.msra.mxu3 %v60_v15  ;;  %v68_v32 = vld [vmem:[%s916_s1] sm:$0x1] }
  0x12   :  { %554 = vmatpush.xpose.msk.msra.mxu0 %vm69_vm0, %v47_v8  ;;  %300 = vmatpush.msra.mxu2 %v43_v16 }
  0x13   :  { %571 = vmatpush.xpose.msk.msra.mxu1 %vm69_vm0, %v63_v9  ;;  %320 = vmatpush.msra.mxu3 %v59_v17 }
  0x14   :  { %301 = vmatpush.msra.mxu2 %v42_v18 }
  0x15   :  { %321 = vmatpush.msra.mxu3 %v58_v19 }
  0x16   :  { %555 = vmatpush.xpose.msk.msra.mxu0 %vm69_vm0, %v46_v10  ;;  %302 = vmatpush.msra.mxu2 %v41_v20 }
  0x17   :  { %572 = vmatpush.xpose.msk.msra.mxu1 %vm69_vm0, %v62_v11  ;;  %322 = vmatpush.msra.mxu3 %v57_v21 }
  0x18   :  { %303 = vmatpush.msra.mxu2 %v40_v22 }
  0x19   :  { %323 = vmatpush.msra.mxu3 %v56_v23 }
  0x1a   :  { %556 = vmatpush.xpose.msk.msra.mxu0 %vm69_vm0, %v45_v12  ;;  %304 = vmatpush.msra.mxu2 %v39_v24 }
  0x1b   :  { %573 = vmatpush.xpose.msk.msra.mxu1 %vm69_vm0, %v61_v13  ;;  %324 = vmatpush.msra.mxu3 %v55_v25 }
  0x1c   :  { %305 = vmatpush.msra.mxu2 %v38_v26 }
  0x1d   :  { %325 = vmatpush.msra.mxu3 %v54_v27 }
  0x1e   :  { %557 = vmatpush.xpose.msk.msra.mxu0 %vm69_vm0, %v44_v14  ;;  %306 = vmatpush.msra.mxu2 %v37_v28 }
  0x1f   :  { %574 = vmatpush.xpose.msk.msra.mxu1 %vm69_vm0, %v60_v15  ;;  %326 = vmatpush.msra.mxu3 %v53_v29 }
  0x20   :  { %307 = vmatpush.msra.mxu2 %v36_v30 }
  0x21   :  { %327 = vmatpush.msra.mxu3 %v52_v31 }
  0x22   :  { %558 = vmatpush.xpose.msk.msra.mxu0 %vm69_vm0, %v43_v16 }
  0x23   :  { %575 = vmatpush.xpose.msk.msra.mxu1 %vm69_vm0, %v59_v17 }
  0x26   :  { %559 = vmatpush.xpose.msk.msra.mxu0 %vm69_vm0, %v42_v18 }
  0x27   :  { %576 = vmatpush.xpose.msk.msra.mxu1 %vm69_vm0, %v58_v19 }
  0x2a   :  { %560 = vmatpush.xpose.msk.msra.mxu0 %vm69_vm0, %v41_v20 }
  0x2b   :  { %577 = vmatpush.xpose.msk.msra.mxu1 %vm69_vm0, %v57_v21 }
  0x2e   :  { %561 = vmatpush.xpose.msk.msra.mxu0 %vm69_vm0, %v40_v22 }
  0x2f   :  { %578 = vmatpush.xpose.msk.msra.mxu1 %vm69_vm0, %v56_v23 }
  0x32   :  { %562 = vmatpush.xpose.msk.msra.mxu0 %vm69_vm0, %v39_v24 }
  0x33   :  { %579 = vmatpush.xpose.msk.msra.mxu1 %vm69_vm0, %v55_v25 }
  0x36   :  { %563 = vmatpush.xpose.msk.msra.mxu0 %vm69_vm0, %v38_v26  ;;  %v332_v26 = vld [vmem:[%s917_s2] sm:$0x1f] }
  0x37   :  { %580 = vmatpush.xpose.msk.msra.mxu1 %vm69_vm0, %v54_v27  ;;  %584 = vmatpush.msk.msrb.mxu2 %vm340_vm15, %v332_v26 }
  0x3a   :  { %564 = vmatpush.xpose.msk.msra.mxu0 %vm69_vm0, %v37_v28 }
  0x3b   :  { %581 = vmatpush.xpose.msk.msra.mxu1 %vm69_vm0, %v53_v29 }
  0x3e   :  { %565 = vmatpush.xpose.msk.msra.mxu0 %vm69_vm0, %v36_v30  ;;  %v595_v30 = vld [vmem:[%s918_s3] ss:$0 sm:$0xff] }
  0x3f   :  { %582 = vmatpush.xpose.msk.msra.mxu1 %vm69_vm0, %v52_v31 }
  0x41   :  { %566 = vmatmul.msk.f32.vlgmr.msra.gmra.mxu0 %vm69_vm0, %v68_v32 }
  0x42   :  { %583 = vmatmul.msk.f32.vlgmr.msra.gmra.mxu1 %vm69_vm0, %v68_v32 }
  0xbe   :  { %v186_v33 = vpop.f32.mrf.mxu0 }
  0xbf   :  { %v206_v34 = vpop.f32.mrf.mxu1  ;;  %596 = vtanh.f32 %v186_v33 }
  0xc0   :  { %598 = vtanh.f32 %v206_v34  ;;  %v365_v34 = vld [vmem:[%s919_s4] sm:$0x1]  ;;  %s539_s4 = sshll.u32 %s632_s23, 4  ;;  %s540_s4 = int_to_ptr.vmem [resolvable:$true] %s539_s4 }
  0xc5   :  { %v597_v35 = vpop.eup %596 }
  0xc6   :  { %v599_v36 = vpop.eup %598  ;;  %v217_v37 = vsel %vm216_vm1, %v597_v35, -inf }
  0xc7   :  { %v218_v38 = vsel %vm216_vm1, %v599_v36, -inf }
  0xc8   :  { %v219_v39 = vmax.f32 %v217_v37, %v218_v38 }
  0xca   :  { %220 = vmax.xlane.f32.xlu0 %v219_v39 }
 0x13d   :  { %v221_v45 = vpop.xlane.xlu0 %220 }
 0x13e   :  { %vm222_vm2 = vcmp.eq.f32.partialorder %v597_v35, %v221_v45  ;;  %vm223_vm3 = vcmp.eq.f32.partialorder %v599_v36, %v221_v45 }
 0x13f   :  { %v224_v46 = vsel %vm222_vm2, %v823_v43, 256.0  ;;  %v225_v47 = vsel %vm223_vm3, %v215_v44, 256.0  ;;  %vm366_vm2 = vcmask 523264   ;;  %vm409_vm3 = vcmask 1042432  }
 0x140   :  { %v226_v48 = vsel %vm216_vm1, %v224_v46, inf  ;;  %v227_v49 = vsel %vm216_vm1, %v225_v47, inf  ;;  %v435_v46 = vld [vmem:[%s920_s5 + $0x18] sm:$0xff]  ;;  %v434_v47 = vld [vmem:[%s920_s5 + $0x10] sm:$0xff] }
 0x141   :  { %v228_v50 = vmin.f32 %v226_v48, %v227_v49  ;;  %v433_v48 = vld [vmem:[%s920_s5 + $0x8] sm:$0xff] }
 0x143   :  { %229 = vmin.xlane.f32.xlu0 %v228_v50 }
 0x1b6   :  { %v230_v51 = vpop.xlane.xlu0 %229 }
 0x1b7   :  { %vm231_vm4 = vcmp.eq.f32.partialorder %v823_v43, %v230_v51  ;;  %vm232_vm5 = vcmp.eq.f32.partialorder %v215_v44, %v230_v51  ;;  %v432_v51 = vld [vmem:[%s920_s5] sm:$0xff] }
 0x1b8   :  { %v235_v52 = vsel %vm231_vm4, -inf, %v597_v35  ;;  %v236_v53 = vsel %vm232_vm5, -inf, %v599_v36  ;;  %v233_v8 = vsel %vm231_vm4, %v221_v45, 0.0  ;;  %v234_v9 = vsel %vm232_vm5, %v221_v45, 0.0  ;;  %v436_v45 = vld [vmem:[%s920_s5 + $0x20] sm:$0xff] }
 0x1b9   :  { %v237_v54 = vsel %vm216_vm1, %v235_v52, -inf  ;;  %v238_v55 = vsel %vm216_vm1, %v236_v53, -inf  ;;  %vm405_vm5 = vcmask 23552  }
 0x1ba   :  { %v239_v56 = vmax.f32 %v237_v54, %v238_v55 }
 0x1bc   :  { %240 = vmax.xlane.f32.xlu1 %v239_v56  ;;  %v465_v56 = vld [vmem:[%s922_s7] sm:$0x1] }
 0x22f   :  { %v241_v57 = vpop.xlane.xlu1 %240 }
 0x230   :  { %vm242_vm6 = vcmp.eq.f32.partialorder %v235_v52, %v241_v57  ;;  %vm243_vm7 = vcmp.eq.f32.partialorder %v236_v53, %v241_v57 }
 0x231   :  { %v244_v58 = vsel %vm242_vm6, %v823_v43, 256.0  ;;  %v245_v59 = vsel %vm243_vm7, %v215_v44, 256.0  ;;  %vm467_vm7 = vcmask 253952  }
 0x232   :  { %v246_v60 = vsel %vm216_vm1, %v244_v58, inf  ;;  %v247_v61 = vsel %vm216_vm1, %v245_v59, inf }
 0x233   :  { %v248_v62 = vmin.f32 %v246_v60, %v247_v61  ;;  %v506_v60 = vld [vmem:[%s923_s8 + $0x18] sm:$0xff]  ;;  %v505_v61 = vld [vmem:[%s923_s8 + $0x10] sm:$0xff] }
 0x235   :  { %249 = vmin.xlane.f32.xlu1 %v248_v62  ;;  %v504_v62 = vld [vmem:[%s923_s8 + $0x8] sm:$0xff] }
 0x2a8   :  { %v250_v63 = vpop.xlane.xlu1 %249 }
 0x2a9   :  { %vm251_vm8 = vcmp.eq.f32.partialorder %v823_v43, %v250_v63  ;;  %vm252_vm9 = vcmp.eq.f32.partialorder %v215_v44, %v250_v63 }
 0x2aa   :  { %v253_v0 = vsel %vm251_vm8, %v241_v57, 0.0  ;;  %v254_v1 = vsel %vm252_vm9, %v241_v57, 0.0  ;;  %v255_v2 = vsel %vm251_vm8, -inf, %v235_v52  ;;  %v256_v3 = vsel %vm252_vm9, -inf, %v236_v53  ;;  %v440_v53 = vld [vmem:[%s921_s6] sm:$0x1] }
 0x2ab   :  { %v277_v4 = vrot.slane %v253_v0, 7  ;;  %v278_v5 = vrot.slane %v254_v1, 7  ;;  %v257_v6 = vsel %vm216_vm1, %v255_v2, -inf  ;;  %v258_v7 = vsel %vm216_vm1, %v256_v3, -inf }
 0x2ac   :  { %v259_v10 = vmax.f32 %v257_v6, %v258_v7  ;;  %vm476_vm8 = vcmask 7168  }
 0x2ad   :  { %v287_v11 = vsel %vm216_vm1, %v233_v8, %v277_v4  ;;  %v288_v12 = vsel %vm216_vm1, %v234_v9, %v278_v5  ;;  %v507_v5 = vld [vmem:[%s924_s9] sm:$0x1] }
 0x2ae   :  { %260 = vmax.xlane.f32.xlu2 %v259_v10 }
 0x321   :  { %v261_v13 = vpop.xlane.xlu2 %260 }
 0x322   :  { %vm262_vm10 = vcmp.eq.f32.partialorder %v255_v2, %v261_v13  ;;  %vm263_vm11 = vcmp.eq.f32.partialorder %v256_v3, %v261_v13  ;;  %v503_v3 = vld [vmem:[%s923_s8] sm:$0xff] }
 0x323   :  { %v264_v14 = vsel %vm262_vm10, %v823_v43, 256.0  ;;  %v265_v15 = vsel %vm263_vm11, %v215_v44, 256.0  ;;  %vm508_vm10 = vcmask 261120   ;;  %vm532_vm11 = vcmask 57344  }
 0x324   :  { %v266_v16 = vsel %vm216_vm1, %v264_v14, inf  ;;  %v267_v17 = vsel %vm216_vm1, %v265_v15, inf }
 0x325   :  { %v268_v18 = vmin.f32 %v266_v16, %v267_v17 }
 0x327   :  { %269 = vmin.xlane.f32.xlu2 %v268_v18 }
 0x39a   :  { %v270_v19 = vpop.xlane.xlu2 %269 }
 0x39b   :  { %vm271_vm12 = vcmp.eq.f32.partialorder %v823_v43, %v270_v19  ;;  %vm272_vm13 = vcmp.eq.f32.partialorder %v215_v44, %v270_v19  ;;  %v437_v44 = vld [vmem:[%s920_s5 + $0x28] sm:$0xff] }
 0x39c   :  { %v273_v20 = vsel %vm271_vm12, %v261_v13, 0.0  ;;  %v274_v21 = vsel %vm272_vm13, %v261_v13, 0.0 }
 0x39d   :  { %v283_v22 = vrot.slane %v273_v20, 6  ;;  %v284_v23 = vrot.slane %v274_v21, 6 }
 0x39f   :  { %v290_v24 = vsel %vm289_vm14, %v287_v11, %v283_v22  ;;  %v291_v25 = vsel %vm289_vm14, %v288_v12, %v284_v23 }
 0x3a0   :  { %308 = vmatmul.f32.vlgmr.msra.gmra.mxu2 %v290_v24  ;;  %328 = vmatmul.f32.vlgmr.msra.gmra.mxu3 %v291_v25 }
 0x423   :  { %v309_v27 = vpop.f32.mrf.mxu2  ;;  %v329_v28 = vpop.f32.mrf.mxu3 }
 0x424   :  { %v330_v29 = vadd.f32 %v329_v28, %v309_v27 }
 0x426   :  { %585 = vmatmul.msk.f32.vlgmr.msrb.gmra.mxu2 %vm69_vm0, %v330_v29  ;;  %vm394_vm0 = vcmask 16384  }
 0x4a9   :  { %v361_v31 = vpop.f32.mrf.mxu2 }
 0x4aa   :  { %v362_v32 = vadd.f32 %v595_v30, %v361_v31 }
 0x4ac   :  { %600 = vtanh.f32 %v362_v32 }
 0x4b2   :  { %v601_v33 = vpop.eup %600 }
 0x4b3   :  { %586 = vmatpush.xpose.msk.msrb.mxu3 %vm366_vm2, %v601_v33  ;;  %588 = vmatpush.msk.msra.mxu2 %vm409_vm3, %v601_v33 }
 0x4b6   :  { %587 = vmatmul.msk.f32.vlgmr.msrb.gmra.mxu3 %vm366_vm2, %v365_v34 }
 0x4b7   :  { %452 = vmatpush.msra.mxu3 %v439_v41 }
 0x4b9   :  { %453 = vmatpush.msra.mxu3 %v438_v42 }
 0x4bb   :  { %454 = vmatpush.msra.mxu3 %v437_v44 }
 0x4bd   :  { %455 = vmatpush.msra.mxu3 %v436_v45 }
 0x4bf   :  { %456 = vmatpush.msra.mxu3 %v435_v46 }
 0x4c1   :  { %457 = vmatpush.msra.mxu3 %v434_v47 }
 0x4c3   :  { %458 = vmatpush.msra.mxu3 %v433_v48 }
 0x4c5   :  { %459 = vmatpush.msra.mxu3 %v432_v51 }
 0x539   :  { %v390_v35 = vpop.f32.mrf.mxu3 }
 0x53a   :  { %602 = vtanh.f32 %v390_v35 }
 0x540   :  { %v603_v36 = vpop.eup %602 }
 0x541   :  { %v395_v37 = vsel %vm394_vm0, %v603_v36, -inf }
 0x542   :  { %396 = vmax.xlane.f32.xlu0 %v395_v37 }
 0x5b5   :  { %v397_v38 = vpop.xlane.xlu0 %396 }
 0x5b6   :  { %vm398_vm4 = vcmp.eq.f32.partialorder %v603_v36, %v397_v38 }
 0x5b7   :  { %v399_v39 = vsel %vm398_vm4, %v823_v43, 3.0 }
 0x5b8   :  { %v400_v40 = vsel %vm394_vm0, %v399_v39, inf }
 0x5b9   :  { %401 = vmin.xlane.f32.xlu1 %v400_v40 }
 0x62c   :  { %v402_v49 = vpop.xlane.xlu1 %401 }
 0x62d   :  { %vm403_vm6 = vcmp.eq.f32.partialorder %v823_v43, %v402_v49 }
 0x62e   :  { %v404_v50 = vsel %vm403_vm6, %v397_v38, 0.0 }
 0x62f   :  { %589 = vmatmul.msk.f32.vlgmr.msra.gmra.mxu2 %vm405_vm5, %v404_v50 }
 0x6b2   :  { %v429_v52 = vpop.f32.mrf.mxu2 }
 0x6b3   :  { %590 = vmatmul.msk.f32.vlgmr.msra.gmra.mxu3 %vm366_vm2, %v429_v52 }
 0x736   :  { %v461_v54 = vpop.f32.mrf.mxu3 }
 0x737   :  { %v462_v55 = vadd.f32 %v461_v54, %v440_v53 }
 0x739   :  { %v464_v57 = vmax.f32 %v462_v55, 0.0 }
 0x73b   :  { %591 = vmatpush.msk.msrb.mxu2 %vm216_vm1, %v464_v57  ;;  %v466_v58 = vmul.f32 %v465_v56, %v464_v57 }
 0x73d   :  { %v468_v59 = vsel %vm467_vm7, %v466_v58, 0.0  ;;  %524 = vmatpush.msra.mxu2 %v506_v60 }
 0x73e   :  { %469 = vadd.xlane.f32.xlu2 %v468_v59 }
 0x73f   :  { %525 = vmatpush.msra.mxu2 %v505_v61 }
 0x741   :  { %526 = vmatpush.msra.mxu2 %v504_v62 }
 0x743   :  { %527 = vmatpush.msra.mxu2 %v503_v3 }
 0x7b1   :  { %v470_v63 = vpop.xlane.xlu2 %469 }
 0x7b2   :  { %604 = vtanh.f32 %v470_v63 }
 0x7b8   :  { %v605_v0 = vpop.eup %604 }
 0x7b9   :  { %vm472_vm1 = vcmp.eq.f32.partialorder %v605_v0, %v605_v0 }
 0x7ba   :  { %v473_v1 = vsel %vm472_vm1, %v823_v43, 1.0 }
 0x7bb   :  { %vm474_vm9 = vcmp.eq.f32.partialorder %v823_v43, %v473_v1 }
 0x7bc   :  { %v475_v2 = vsel %vm474_vm9, %v605_v0, 0.0 }
 0x7bd   :  { %592 = vmatmul.msk.f32.vlgmr.msrb.gmra.mxu2 %vm476_vm8, %v475_v2 }
 0x840   :  { %v500_v4 = vpop.f32.mrf.mxu2 }
 0x841   :  { %593 = vmatmul.msk.f32.vlgmr.msra.gmra.mxu2 %vm508_vm10, %v500_v4 }
 0x8c4   :  { %v529_v43 = vpop.f32.mrf.mxu2 }
 0x8c5   :  { %v530_v6 = vadd.f32 %v529_v43, %v507_v5 }
 0x8c7   :  { %533 = vst.msk [vmem:[#allocation2] sm:$0x1] %vm532_vm11, %v530_v6 }
 0x8c8   :  { %544 = dma.vmem_to_hbm [thread:$0]  %s540_s4, 16, %s542_s26, [#allocation3]  }
 0x8c9   :  { %630 = dma.done.wait [#allocation3], 16  }
 0x8ca   :  { %631 = vsyncadd [#allocation3], 4294967280 }
 0x8cb   :  { %549 = vsyncpa [#allocation3], 1 }

</bundles_post_ra>
